<compile_context>
chip_gen: v5e
topology: v5e:2x2
jax: 0.10.0
libtpu: 0.0.40
codegen_flags: <defaults>
</compile_context>

<pallas_src>
import math

import jax
import jax.numpy as jnp
from jax.experimental import pallas as pl
from jax.experimental.pallas import tpu as pltpu


def _round_up(x, m):
    return ((x + m - 1) // m) * m


def _vmem_capacity_bytes():
    """Physical VMEM per core; falls back to the v7x worst case (64 MiB)."""
    try:
        info = pltpu.get_tpu_info()
        for name in ("vmem_capacity_bytes", "vmem_size_bytes", "vmem_bytes"):
            cap = getattr(info, name, None)
            if cap:
                return int(cap)
    except Exception:
        pass
    return 64 * 1024 * 1024


def _tile_vmem_bytes(c_in, thw, tc, itemsize):
    # Double-buffered x / weight / output blocks plus the lane-padded f32 bias column.
    x_blk = c_in * thw * itemsize
    w_blk = tc * c_in * itemsize
    o_blk = tc * thw * itemsize
    b_blk = max(tc, 8) * 128 * 4
    return 2 * (x_blk + w_blk + o_blk + b_blk)


def _select_tiles(c_in, c_out, hw, itemsize, budget):
    """Pick (thw, tc): lane tile over H*W and sublane tile over C_out.

    Prefers large thw (512-1024, multiple of 128) to keep strided DMA rows
    efficient and minimize weight re-fetch, then the largest tc (ideally the
    full C_out, collapsing that grid axis) that still fits the VMEM budget.
    """
    thw_cap = _round_up(hw, 128)
    thw_list, seen = [], set()
    for t in (1024, 512, 256, 128):
        t = min(t, thw_cap)
        if t not in seen:
            seen.add(t)
            thw_list.append(t)

    tc_list = [c_out] + [t for t in (1024, 512, 256, 128, 64, 32, 16, 8) if t < c_out]

    for thw in thw_list:
        for tc in tc_list:
            if _tile_vmem_bytes(c_in, thw, tc, itemsize) <= budget:
                return thw, tc
    # Last resort: smallest tiles (compiler may still spill, but stays legal).
    return thw_list[-1], tc_list[-1]


def convfc_kernel(x_ref, w_ref, b_ref, o_ref):
    # x_ref: (C_in, thw)   -- batch dim squeezed away by the BlockSpec
    # w_ref: (tc, C_in)    -- C_out tile of the weight
    # b_ref: (tc, 1)       -- bias column (f32), broadcast over lanes
    # o_ref: (tc, thw)     -- lane dim = thw (multiple of 128) -> dense vst
    acc = jnp.dot(w_ref[...], x_ref[...], preferred_element_type=jnp.float32)
    o_ref[...] = (acc + b_ref[...]).astype(o_ref.dtype)


def convfc_forward(x_nchw, weight, bias):
    """1x1 Conv2d forward (ConvFC), computed natively in NCHW.

    x_nchw: (N, C_in, H, W)
    weight: (C_out, C_in, 1, 1)
    bias:   (C_out,) or None
    returns (N, C_out, H, W)
    """
    N, C_in, H, W = x_nchw.shape
    C_out = weight.shape[0]
    HW = H * W
    itemsize = x_nchw.dtype.itemsize

    # NCHW -> (N, C_in, H*W): pure reshape, no transpose / extra HBM pass.
    x_flat = x_nchw.reshape(N, C_in, HW)
    w_mat = weight.reshape(C_out, C_in)
    if bias is None:
        b_col = jnp.zeros((C_out, 1), dtype=jnp.float32)
    else:
        # Bias is added in the f32 accumulator regardless of input dtype.
        b_col = bias.reshape(C_out, 1).astype(jnp.float32)

    # Generation-aware VMEM budget: ~75% of physical VMEM as the scoped limit
    # (48 MiB on 64-MiB v7x, 96 MiB on 128-MiB v5e/v6e), minus margin for
    # compiler-internal scratch.
    cap = _vmem_capacity_bytes()
    vmem_limit = min(int(cap * 3 // 4), 112 * 1024 * 1024)
    budget = max(vmem_limit - 4 * 1024 * 1024, 8 * 1024 * 1024)

    thw, tc = _select_tiles(C_in, C_out, HW, itemsize, budget)

    grid_j = pl.cdiv(HW, thw)      # masked tail block instead of wrapper pad/slice
    grid_c = pl.cdiv(C_out, tc)    # masked tail block for awkward C_out as well
    # Grid order: j (usually the largest, balanced axis) leading for v7x megacore
    # sharding; c innermost so the x tile stays resident across the C_out loop.
    grid = (grid_j, N, grid_c)

    cost = pl.CostEstimate(
        flops=2 * N * C_in * C_out * HW,
        transcendentals=0,
        bytes_accessed=(
            N * C_in * HW * itemsize            # x streamed exactly once
            + N * grid_j * C_out * C_in * itemsize  # weight re-fetched per (j, n)
            + N * grid_j * C_out * 4                # f32 bias column
            + N * C_out * HW * itemsize             # output
        ),
    )

    out_flat = pl.pallas_call(
        convfc_kernel,
        out_shape=jax.ShapeDtypeStruct((N, C_out, HW), x_nchw.dtype),
        grid_spec=pltpu.PrefetchScalarGridSpec(
            num_scalar_prefetch=0,
            grid=grid,
            in_specs=[
                # x: one batch, full C_in, one H*W tile; constant in c -> resident.
                pl.BlockSpec((pl.Squeezed(), C_in, thw), lambda j, n, c: (n, 0, j)),
                # weight: one C_out tile, full C_in.
                pl.BlockSpec((tc, C_in), lambda j, n, c: (c, 0)),
                # bias column for the same C_out tile.
                pl.BlockSpec((tc, 1), lambda j, n, c: (c, 0)),
            ],
            out_specs=pl.BlockSpec(
                (pl.Squeezed(), tc, thw), lambda j, n, c: (n, c, j)
            ),
        ),
        compiler_params=pltpu.CompilerParams(
            # No reduction axis -> every grid axis is independent.
            dimension_semantics=("parallel", "parallel", "parallel"),
            vmem_limit_bytes=vmem_limit,
        ),
        cost_estimate=cost,
    )(x_flat, w_mat, b_col)

    return out_flat.reshape(N, C_out, H, W)


def init_convfc_params(key, in_planes, out_planes, dtype=jnp.float32):
    """Deterministic init matching nn.Conv2d default (kaiming uniform + uniform bias)."""
    kw, kb = jax.random.split(key)
    fan_in = in_planes * 1 * 1
    bound_w = math.sqrt(6.0 / ((1 + 5.0) * fan_in))  # kaiming_uniform a=sqrt(5)
    weight = jax.random.uniform(
        kw, (out_planes, in_planes, 1, 1), dtype=dtype, minval=-bound_w, maxval=bound_w
    )
    bound_b = 1.0 / math.sqrt(fan_in)
    bias = jax.random.uniform(
        kb, (out_planes,), dtype=dtype, minval=-bound_b, maxval=bound_b
    )
    return weight, bias


if __name__ == "__main__":
    key = jax.random.PRNGKey(0)
    k_x, k_p = jax.random.split(key)

    # Small shapes consistent with the module: batch=2, in_planes=4, spatial=16, out_planes=8
    N, C_in, H, W = 2, 4, 16, 16
    C_out = 8

    x = jax.random.normal(k_x, (N, C_in, H, W), dtype=jnp.float32)
    weight, bias = init_convfc_params(k_p, C_in, C_out)

    out = convfc_forward(x, weight, bias)
    out = jax.block_until_ready(out)

    # Reference check against plain-JAX 1x1 conv semantics
    ref = jnp.einsum("nchw,oc->nohw", x, weight.reshape(C_out, C_in)) + bias[None, :, None, None]
    assert out.shape == (N, C_out, H, W)
    assert jnp.allclose(out, ref, atol=1e-5, rtol=1e-5)

    # Exercise the bias=None path and a non-128-aligned spatial size
    # (single partially-out-of-bounds lane block, no wrapper pad/slice).
    x2 = jax.random.normal(k_x, (N, C_in, 10, 10), dtype=jnp.float32)
    out2 = jax.block_until_ready(convfc_forward(x2, weight, None))
    ref2 = jnp.einsum("nchw,oc->nohw", x2, weight.reshape(C_out, C_in))
    assert jnp.allclose(out2, ref2, atol=1e-5, rtol=1e-5)

    print("KERNEL_OK")
</pallas_src>

<mosaic_0001>
module attributes {stable_mosaic.version = 11 : i64} {
  func.func @convfc_kernel(%arg0: i32, %arg1: i32, %arg2: i32, %arg3: memref<1x4x256xf32, #tpu.memory_space<vmem>>, %arg4: memref<8x4xf32, #tpu.memory_space<vmem>>, %arg5: memref<8x1xf32, #tpu.memory_space<vmem>>, %arg6: memref<1x8x256xf32, #tpu.memory_space<vmem>>) attributes {dimension_semantics = [#tpu.dimension_semantics<parallel>, #tpu.dimension_semantics<parallel>, #tpu.dimension_semantics<parallel>], iteration_bounds = array<i64: 1, 2, 1>, scalar_prefetch = 0 : i64, scratch_operands = 0 : i64, tpu.core_type = #tpu.core_type<tc>, window_params = [{transform_indices = @transform_0, window_bounds = array<i64: 1, 4, 256>}, {transform_indices = @transform_1, window_bounds = array<i64: 8, 4>}, {transform_indices = @transform_2, window_bounds = array<i64: 8, 1>}, {transform_indices = @transform_3, window_bounds = array<i64: 1, 8, 256>}]} {
    %c0 = arith.constant 0 : index
    %c0_0 = arith.constant 0 : index
    %0 = vector.load %arg4[%c0, %c0_0] : memref<8x4xf32, #tpu.memory_space<vmem>>, vector<8x4xf32>
    %c0_1 = arith.constant 0 : index
    %c0_2 = arith.constant 0 : index
    %c0_3 = arith.constant 0 : index
    %1 = vector.load %arg3[%c0_1, %c0_2, %c0_3] : memref<1x4x256xf32, #tpu.memory_space<vmem>>, vector<1x4x256xf32>
    %2 = vector.shape_cast %1 : vector<1x4x256xf32> to vector<4x256xf32>
    %cst = arith.constant dense<0.000000e+00> : vector<8x256xf32>
    %3 = tpu.matmul %0, %2, %cst {dimension_numbers = #tpu.dot_dimension_numbers<[1], [0], [0], [1], [0, 0, 1, 1], [], []>} : vector<8x4xf32>, vector<4x256xf32>, vector<8x256xf32> -> vector<8x256xf32>
    %c0_4 = arith.constant 0 : index
    %c0_5 = arith.constant 0 : index
    %4 = vector.load %arg5[%c0_4, %c0_5] : memref<8x1xf32, #tpu.memory_space<vmem>>, vector<8x1xf32>
    %5 = vector.broadcast %4 : vector<8x1xf32> to vector<8x256xf32>
    %6 = arith.addf %3, %5 : vector<8x256xf32>
    %c0_6 = arith.constant 0 : index
    %c0_7 = arith.constant 0 : index
    %c0_8 = arith.constant 0 : index
    %7 = vector.load %arg6[%c0_6, %c0_7, %c0_8] : memref<1x8x256xf32, #tpu.memory_space<vmem>>, vector<1x8x256xf32>
    %8 = vector.shape_cast %7 : vector<1x8x256xf32> to vector<8x256xf32>
    %9 = vector.shape_cast %6 : vector<8x256xf32> to vector<1x8x256xf32>
    tpu.vector_store %arg6[%c0_6, %c0_7, %c0_8], %9 {strides = array<i32>} : memref<1x8x256xf32, #tpu.memory_space<vmem>>, vector<1x8x256xf32>,
    return
  }
  func.func @transform_0(%arg0: i32, %arg1: i32, %arg2: i32) -> (i32, i32, i32) {
    %c0_i32 = arith.constant 0 : i32
    %c0_i32_0 = arith.constant 0 : i32
    return %arg1, %c0_i32, %arg0 : i32, i32, i32
  }
  func.func @transform_1(%arg0: i32, %arg1: i32, %arg2: i32) -> (i32, i32) {
    %c0_i32 = arith.constant 0 : i32
    %c0_i32_0 = arith.constant 0 : i32
    return %arg2, %c0_i32 : i32, i32
  }
  func.func @transform_2(%arg0: i32, %arg1: i32, %arg2: i32) -> (i32, i32) {
    %c0_i32 = arith.constant 0 : i32
    %c0_i32_0 = arith.constant 0 : i32
    return %arg2, %c0_i32 : i32, i32
  }
  func.func @transform_3(%arg0: i32, %arg1: i32, %arg2: i32) -> (i32, i32, i32) {
    %c0_i32 = arith.constant 0 : i32
    return %arg1, %arg2, %arg0 : i32, i32, i32
  }
}

</mosaic_0001>

<bundles_post_ra>
// kernel: tpu_custom_call.1
= control target key start
LH: loop header
LB: loop body
LE: loop exit
PB: predicated region body
PF: predicated region fallthrough
CT: control target
= control target key end

     0   :  { %8 = vsyncpa [#allocation3], 0  ;;  %s720_s0 = inlined_call_operand.vmem [shape: f32[2,4,256], index: 0, kind: input, shape index: {}]   ;;  %s721_s1 = inlined_call_operand.vmem [shape: f32[8,4], index: 1, kind: input, shape index: {}]   ;;  %s722_s2 = inlined_call_operand.vmem [shape: f32[8,1], index: 2, kind: input, shape index: {}]   ;;  %s723_s3 = inlined_call_operand.hbm [shape: f32[2,8,256], index: 3, kind: output, shape index: {}]  }
   0x1   :  { %10 = vsyncpa [#allocation3 + $0x1], 0  ;;  %s617_s12 = smov 0   ;;  %s619_s13 = smov 0  }
   0x2   :  { %s621_s14 = smov 0   ;;  %s623_s15 = smov 0  }
   0x3   :  { %s625_s16 = smov 0   ;;  %s627_s17 = smov 0  }
   0x4 LB: > { %s438_s18 = sadd.s32 4294967295, %s594_s17   ;;  %s439_s19 = sadd.s32 4294967294, %s594_s17   ;;  %s594_s17 = sphi %s627_s17, %s16_s17   ;;  %s590_s16 = sphi %s625_s16, %s730_s16   ;;  %s586_s15 = sphi %s623_s15, %s729_s15   ;;  %s582_s14 = sphi %s621_s14, %s728_s14   ;;  %s578_s13 = sphi %s619_s13, %s727_s13   ;;  %s574_s12 = sphi %s617_s12, %s726_s12  }
   0x5   : > { %s31_s20 = sadd.s32 1, %s590_s16  ;;  %s126_s21 = sadd.s32 1, %s582_s14 }
   0x6   : > { %p33_p0 = scmp.ge.s32.totalorder %s31_s20, 2  ;;  %p136_p1 = scmp.ne.s32.totalorder %s582_s14, %s578_s13 }
   0x7   : > { %p137_p2 = scmp.eq.s32.totalorder %s438_s18, 1  ;;  %p142_p3 = scmp.ne.s32.totalorder %s578_s13, %s574_s12 }
   0x8   : > { %s732_s20 = smov (%p33_p0, %s31_s20), 0  ;;  %p143_p5 = scmp.eq.s32.totalorder %s439_s19, 1 }
   0x9   : > { %p657_p4 = por %p137_p2, %p136_p1  ;;  %s119_s23 = ssub.s32 %s590_s16, %s732_s20 }
   0xa   : > { %p444_p6 = scmp.ge.s32.totalorder %s594_s17, 1  ;;  %p124_p7 = scmp.eq.s32.totalorder %s119_s23, 0 }
   0xb   : > { %p664_p8 = por %p143_p5, %p142_p3  ;;  %p188_p9 = scmp.lt.s32.totalorder %s594_s17, 3 }
   0xc   : > { %s670_s25 = scalar_select %p124_p7, %s582_s14, %s126_s21  }
   0xd   : > { %p189_p10 = pnand %p444_p6, %p188_p9 }
   0xe   : > { %p225_p11 = scmp.lt.s32.totalorder (!%p189_p10), %s586_s15, 1  ;;  %s221_s8 = sand.u32 (!%p189_p10), 1, %s578_s13  }
   0xf   : > { %192 = sbr.rel (%p189_p10) target bundleno = 166 (0xa6), region = 32  ;;  %s445_s9 = sshll.u32 (!%p189_p10), %s221_s8, 4 }
  0x10   : > { %s458_s10 = sshll.u32 (!%p189_p10), %s586_s15, 4  ;;  %s223_s21 = scalar_lea.vmem (!%p189_p10), [#allocation2], %s445_s9 }
  0x11   : > { %s322_s19 = scalar_lea.hbm (!%p189_p10), %s723_s3, %s458_s10  ;;  %s324_s23 = sshll.u32 (!%p189_p10), %s223_s21, 4  ;;  %s325_s23 = int_to_ptr.vmem [resolvable:$true] %s324_s23 }
  0x12   : > { %s326_s26 = sshll.u32 (!%p189_p10), %s322_s19, 4  ;;  %s307_s27 = scalar_lea.sflag (!%p189_p10), [#allocation3], %s221_s8  ;;  %s327_s26 = int_to_ptr.hbm [resolvable:$true] %s326_s26 }
  0x13   : > { %s536_s4 = scalar_lea.hbm (!%p189_p10), %s723_s3, 32 }
  0x14   : > { %v245_v0 = vld [vmem:[%s722_s2] sm:$0xff]  ;;  %v596_v1 = vmov 0   ;;  %s226_s28 = scalar_select %p225_p11, %s586_s15, 1  ;;  %vm259_vm0 = vcmask 1043456   ;;  %vm255_vm1 = vcmask 31744  }
  0x15   : > { %515 = vset.pattern.permute.xlu0 %v596_v1  ;;  %v243_v3 = vld [vmem:[%s721_s1] sm:$0xff] }
  0x16   : > { %248 = vperm.xlu0 %515, %v245_v0   ;;  %s457_s29 = sshll.u32 %s226_s28, 3  ;;  %s530_s28 = sshra.s32 %s327_s26, 4  ;;  %s531_s28 = int_to_ptr.hbm [resolvable:$true] %s530_s28 }
  0x17   : > { %s232_s5 = scalar_lea.vmem %s720_s0, %s457_s29  ;;  %s532_s15 = scalar_lea.hbm %s531_s28, 16 }
  0x18   : > { %v244_v2 = vld [vmem:[%s232_s5] sm:$0xff]  ;;  %p533_p12 = scmp.ne.s32.totalorder %s531_s28, %s532_s15  ;;  %p537_p1 = scmp.lt.s32.totalorder %s531_s28, %s723_s3 }
  0x19   : > { %252 = vst [vmem:[#allocation1] ss:$2 sm:$0xff] %v244_v2  ;;  %p538_p2 = scmp.lt.s32.totalorder %s536_s4, %s532_s15 }
  0x1a   : > { %p534_p13 = pnand %p533_p12, %p657_p4 }
  0x1b   : > { %p539_p3 = por %p538_p2, %p537_p1 }
  0x1c   : > { %p535_p0 = pneg %p534_p13 }
  0x1e   : > { %p540_p5 = pnand %p539_p3, %p535_p0 }
  0x20   : > { %v253_v4 = vld.sshfl [vmem:[#allocation1] sm:$0xff pattern:$0x75316420]  ;;  %v254_v5 = vld.sshfl [vmem:[#allocation1 + $0x8] sm:$0xff pattern:$0x75316420] }
  0x21   : > { %448 = vmatpush.msk.msra.mxu0 %vm259_vm0, %v253_v4  ;;  %450 = vmatpush.msk.msra.mxu1 %vm259_vm0, %v254_v5 }
  0x22   : > { %449 = vmatmul.msk.f32.vlgmr.msra.gmra.mxu0 %vm255_vm1, %v243_v3  ;;  %451 = vmatmul.msk.f32.vlgmr.msra.gmra.mxu1 %vm255_vm1, %v243_v3 }
  0x88   : > { %v249_v6 = vpop.permute.xlu0 %248 }
  0x9f   : > { %v281_v7 = vpop.f32.mrf.mxu0  ;;  %v301_v8 = vpop.f32.mrf.mxu1 }
  0xa0   : > { %v282_v9 = vadd.f32 %v281_v7, %v249_v6  ;;  %v302_v10 = vadd.f32 %v301_v8, %v249_v6 }
  0xa2   : > { %304 = vst [vmem:[%s223_s21] sm:$0xff] %v282_v9 }
  0xa3   : > { %305 = vst [vmem:[%s223_s21 + $0x8] sm:$0xff] %v302_v10 }
  0xa4   : > { %543 = shalt.err (!%p540_p5)
}
  0xa5   : > { %459 = dma.vmem_to_hbm [thread:$0]  (%p657_p4), %s325_s23, 256, %s327_s26, %s307_s27  }
  0xa6 PF: > { %p465_p6 = scmp.ge.s32.totalorder %s594_s17, 2  ;;  %s338_s7 = sand.u32 1, %s574_s12  }
  0xa7   : > { %s339_s8 = scalar_lea.sflag [#allocation3], %s338_s7 }
  0xa8   : > { %p462_p7 = pnand %p465_p6, %p664_p8 }
  0xaa   : > { %p463_p9 = pneg %p462_p7 }
  0xac   : > { %569 = dma.done.wait (%p463_p9), %s339_s8, 256  }
  0xad   : > { %571 = vsyncadd (%p463_p9), %s339_s8, 4294967040  ;;  %s16_s17 = sadd.s32 1, %s594_s17   ;;  %s726_s12 = smov %s578_s13 }
  0xae   : > { %p13_p10 = scmp.ge.s32.totalorder %s16_s17, 4   ;;  %s727_s13 = smov %s582_s14 }
  0xaf   : > { %s728_s14 = smov %s670_s25  ;;  %s729_s15 = smov %s590_s16 }
  0xb0   : > { %s730_s16 = smov %s732_s20  ;;  %15 = sbr.rel (!%p13_p10) target bundleno = 4 (0x4), region = 73 }
  0xb5   :  { %345 = vsyncpa [#allocation3], 1 }
  0xb6   :  { %347 = vsyncpa [#allocation3 + $0x1], 1 }

</bundles_post_ra>
